<compile_context>
chip_gen: v6e
topology: v6e:2x2x1
jax: 0.10.0
libtpu: 0.0.40
codegen_flags: <defaults>
</compile_context>

<pallas_src>
import jax
import jax.numpy as jnp
from jax.experimental import pallas as pl
from jax.experimental.pallas import tpu as pltpu

_LANE = 128      # vreg lane width
_SUBLANE = 8     # vreg sublane count (f32)


def _round_up(x, m):
    return (x + m - 1) // m * m


def _epilogue_dtype():
    """bf16 bias-add/ReLU epilogue on v6e/v7x (bf16-native VPU); f32 on v5e."""
    try:
        kind = jax.devices()[0].device_kind.lower()
    except Exception:
        kind = ""
    return jnp.float32 if "v5" in kind else jnp.bfloat16


def _qnet_kernel(x_ref, w1_ref, b1_ref, w2_ref, b2_ref, w3_ref, b3_ref, o_ref):
    # x tile: (TB, in_pad) bf16. Weights: bf16, lane-dense, zero-padded.
    # Biases: (1, padded_out) rows in the epilogue dtype (zero in padded lanes).
    epi = b1_ref.dtype                      # f32 on v5e, bf16 on v6e/v7x
    x = x_ref[...]

    # fc1 + ReLU  (MXU matmul, f32 accumulation; epilogue on the VPU)
    h = jnp.dot(x, w1_ref[...], preferred_element_type=jnp.float32)
    h = jnp.maximum(h.astype(epi) + b1_ref[...], 0).astype(w2_ref.dtype)

    # fc2 + ReLU
    h = jnp.dot(h, w2_ref[...], preferred_element_type=jnp.float32)
    h = jnp.maximum(h.astype(epi) + b2_ref[...], 0).astype(w3_ref.dtype)

    # out (no activation) -> bf16 lane-dense store
    q = jnp.dot(h, w3_ref[...], preferred_element_type=jnp.float32)
    o_ref[...] = (q.astype(epi) + b3_ref[...]).astype(o_ref.dtype)


def linear_qnet_forward(x, packed, out_features, *, block_b=1024):
    """Forward pass.

    x:       [B, input_size] float32.
    packed:  dict from pack_params() (lane-dense padded bf16 weights,
             biases in the epilogue dtype).
    Returns: [B, out_features] float32 Q-values.
    """
    B, in_features = x.shape
    in_pad = packed["w1"].shape[0]
    h_pad = packed["w2"].shape[0]
    o_pad = packed["w3"].shape[1]

    # Batch tile selection:
    #  * step-overhead bound -> big tiles (up to block_b rows per step),
    #  * but guarantee >= 2 grid steps when B >= 16 so the "parallel" batch
    #    axis gives both of v7x's TensorCores work.
    if B >= 16:
        tb = _round_up(-(-B // 2), _SUBLANE)   # ceil(B/2) rounded to sublanes
    else:
        tb = _round_up(B, _SUBLANE)
    tb = min(tb, block_b)
    b_pad = _round_up(B, tb)

    # Single fused pad of the bf16 copy of x (rows -> b_pad, cols -> in_pad).
    # Column zero-padding is REQUIRED: padded lanes must hit the zero-padded
    # weight rows as 0, not uninitialized garbage (NaN * 0 = NaN).
    x_p = jnp.pad(x.astype(jnp.bfloat16),
                  ((0, b_pad - B), (0, in_pad - in_features)))

    grid = (b_pad // tb,)
    resident = lambda i: (0, 0)   # weights/biases stay in VMEM across batch tiles
    # NOTE: resident blocks are still double-buffered by default (~96 KiB total
    # here); pl.Buffered(1) would shave one prologue DMA but is not worth the
    # portability risk at this size.

    nbytes = lambda a: a.size * a.dtype.itemsize
    cost = pl.CostEstimate(
        flops=2 * b_pad * (in_pad * h_pad + h_pad * h_pad + h_pad * o_pad),
        transcendentals=0,
        bytes_accessed=(nbytes(x_p)
                        + sum(nbytes(v) for v in packed.values())
                        + b_pad * o_pad * 2),
    )

    q_pad = pl.pallas_call(
        _qnet_kernel,
        out_shape=jax.ShapeDtypeStruct((b_pad, o_pad), jnp.bfloat16),
        grid_spec=pltpu.PrefetchScalarGridSpec(
            num_scalar_prefetch=0,
            grid=grid,
            in_specs=[
                pl.BlockSpec((tb, in_pad), lambda i: (i, 0)),   # x tile
                pl.BlockSpec((in_pad, h_pad), resident),        # w1
                pl.BlockSpec((1, h_pad), resident),             # b1
                pl.BlockSpec((h_pad, h_pad), resident),         # w2
                pl.BlockSpec((1, h_pad), resident),             # b2
                pl.BlockSpec((h_pad, o_pad), resident),         # w3
                pl.BlockSpec((1, o_pad), resident),             # b3
            ],
            out_specs=pl.BlockSpec((tb, o_pad), lambda i: (i, 0)),
        ),
        compiler_params=pltpu.CompilerParams(
            # Independent batch tiles -> shard across v7x's 2 TCs; harmless on
            # single-TC v5e/v6e.
            dimension_semantics=("parallel",),
        ),
        cost_estimate=cost,
    )(x_p, packed["w1"], packed["b1"], packed["w2"], packed["b2"],
      packed["w3"], packed["b3"])

    return q_pad[:B, :out_features].astype(jnp.float32)


def init_params(key, input_size, hidden_size, output_size):
    """f32 params matching the PyTorch module.

    PyTorch: weight ~ N(0, 0.1) (explicit in __init__),
             bias   ~ U(-1/sqrt(fan_in), 1/sqrt(fan_in)) (nn.Linear default).
    Weights stored as (in_features, out_features) = W_torch.T.
    """
    ks = jax.random.split(key, 6)

    def w(k, fan_in, fan_out):
        return 0.1 * jax.random.normal(k, (fan_in, fan_out), dtype=jnp.float32)

    def b(k, fan_in, fan_out):
        bound = 1.0 / jnp.sqrt(jnp.float32(fan_in))
        return jax.random.uniform(
            k, (1, fan_out), dtype=jnp.float32, minval=-bound, maxval=bound
        )

    return {
        "w1": w(ks[0], input_size, hidden_size),
        "b1": b(ks[1], input_size, hidden_size),
        "w2": w(ks[2], hidden_size, hidden_size),
        "b2": b(ks[3], hidden_size, hidden_size),
        "w3": w(ks[4], hidden_size, output_size),
        "b3": b(ks[5], hidden_size, output_size),
    }


def pack_params(params, epilogue_dtype=None):
    """Zero-pad feature dims to multiples of 128 lanes; weights -> bf16,
    biases -> epilogue dtype (bf16 on v6e/v7x, f32 on v5e)."""
    if epilogue_dtype is None:
        epilogue_dtype = _epilogue_dtype()

    def pad2(a, rows, cols, dtype):
        a = a.astype(dtype)
        return jnp.pad(a, ((0, rows - a.shape[0]), (0, cols - a.shape[1])))

    in_f, hid = params["w1"].shape
    out_f = params["w3"].shape[1]
    in_pad = _round_up(in_f, _LANE)
    h_pad = _round_up(hid, _LANE)
    o_pad = _round_up(out_f, _LANE)

    return {
        "w1": pad2(params["w1"], in_pad, h_pad, jnp.bfloat16),
        "b1": pad2(params["b1"], 1, h_pad, epilogue_dtype),
        "w2": pad2(params["w2"], h_pad, h_pad, jnp.bfloat16),
        "b2": pad2(params["b2"], 1, h_pad, epilogue_dtype),
        "w3": pad2(params["w3"], h_pad, o_pad, jnp.bfloat16),
        "b3": pad2(params["b3"], 1, o_pad, epilogue_dtype),
    }


def _reference_forward_f32(x, params):
    """Pure-JAX f32 reference of the original module's math (unpadded)."""
    h = jnp.maximum(x @ params["w1"] + params["b1"], 0.0)
    h = jnp.maximum(h @ params["w2"] + params["b2"], 0.0)
    return h @ params["w3"] + params["b3"]


def _reference_forward_packed(x, packed, in_features, out_features):
    """Pure-JAX reference mirroring the kernel's padded bf16/epilogue math."""
    epi = packed["b1"].dtype
    in_pad = packed["w1"].shape[0]
    xb = jnp.pad(x.astype(jnp.bfloat16), ((0, 0), (0, in_pad - in_features)))
    h = jnp.dot(xb, packed["w1"], preferred_element_type=jnp.float32)
    h = jnp.maximum(h.astype(epi) + packed["b1"], 0).astype(jnp.bfloat16)
    h = jnp.dot(h, packed["w2"], preferred_element_type=jnp.float32)
    h = jnp.maximum(h.astype(epi) + packed["b2"], 0).astype(jnp.bfloat16)
    q = jnp.dot(h, packed["w3"], preferred_element_type=jnp.float32)
    q = (q.astype(epi) + packed["b3"]).astype(jnp.bfloat16)
    return q[:, :out_features].astype(jnp.float32)


if __name__ == "__main__":
    key = jax.random.PRNGKey(0)
    k_param, k_x1, k_x2 = jax.random.split(key, 3)

    # Small shapes consistent with the module (a DQN-style state vector).
    input_size, hidden_size, output_size = 16, 32, 4
    params = init_params(k_param, input_size, hidden_size, output_size)
    packed = pack_params(params)

    # batch=8 exercises the single-step grid; batch=64 exercises >=2 grid steps
    # (the v7x megacore path) with identical weights.
    for batch, kx in ((8, k_x1), (64, k_x2)):
        x = jax.random.normal(kx, (batch, input_size), dtype=jnp.float32)

        q_values = jax.block_until_ready(
            linear_qnet_forward(x, packed, output_size))
        assert q_values.shape == (batch, output_size)

        # Tight check vs a pure-JAX reference using identical padded/bf16 math.
        ref_pk = _reference_forward_packed(x, packed, input_size, output_size)
        assert jnp.allclose(q_values, ref_pk, atol=2e-2, rtol=2e-2), \
            "packed ref mismatch"

        # Loose check vs the original f32 module semantics (bf16 quantization
        # is the only source of difference).
        ref_f32 = _reference_forward_f32(x, params)
        assert jnp.allclose(q_values, ref_f32, atol=6e-2, rtol=6e-2), \
            "f32 ref mismatch"

    # TODO(synk): the module's .save() (torch.save to disk) has no kernel
    # equivalent and is intentionally not implemented.
    print("KERNEL_OK")
</pallas_src>

<mosaic_0001>
module attributes {stable_mosaic.version = 11 : i64} {
  func.func @_qnet_kernel(%arg0: i32, %arg1: memref<8x128xbf16, #tpu.memory_space<vmem>>, %arg2: memref<128x128xbf16, #tpu.memory_space<vmem>>, %arg3: memref<1x128xbf16, #tpu.memory_space<vmem>>, %arg4: memref<128x128xbf16, #tpu.memory_space<vmem>>, %arg5: memref<1x128xbf16, #tpu.memory_space<vmem>>, %arg6: memref<128x128xbf16, #tpu.memory_space<vmem>>, %arg7: memref<1x128xbf16, #tpu.memory_space<vmem>>, %arg8: memref<8x128xbf16, #tpu.memory_space<vmem>>) attributes {dimension_semantics = [#tpu.dimension_semantics<parallel>], iteration_bounds = array<i64: 1>, scalar_prefetch = 0 : i64, scratch_operands = 0 : i64, tpu.core_type = #tpu.core_type<tc>, window_params = [{transform_indices = @transform_0, window_bounds = array<i64: 8, 128>}, {pipeline_mode = #tpu.pipeline_mode<synchronous>, transform_indices = @transform_1, window_bounds = array<i64: 128, 128>}, {pipeline_mode = #tpu.pipeline_mode<synchronous>, transform_indices = @transform_2, window_bounds = array<i64: 1, 128>}, {pipeline_mode = #tpu.pipeline_mode<synchronous>, transform_indices = @transform_3, window_bounds = array<i64: 128, 128>}, {pipeline_mode = #tpu.pipeline_mode<synchronous>, transform_indices = @transform_4, window_bounds = array<i64: 1, 128>}, {pipeline_mode = #tpu.pipeline_mode<synchronous>, transform_indices = @transform_5, window_bounds = array<i64: 128, 128>}, {pipeline_mode = #tpu.pipeline_mode<synchronous>, transform_indices = @transform_6, window_bounds = array<i64: 1, 128>}, {transform_indices = @transform_7, window_bounds = array<i64: 8, 128>}]} {
    %c0 = arith.constant 0 : index
    %c0_0 = arith.constant 0 : index
    %0 = vector.load %arg1[%c0, %c0_0] : memref<8x128xbf16, #tpu.memory_space<vmem>>, vector<8x128xbf16>
    %c0_1 = arith.constant 0 : index
    %c0_2 = arith.constant 0 : index
    %1 = vector.load %arg2[%c0_1, %c0_2] : memref<128x128xbf16, #tpu.memory_space<vmem>>, vector<128x128xbf16>
    %cst = arith.constant dense<0.000000e+00> : vector<8x128xf32>
    %2 = tpu.matmul %0, %1, %cst {dimension_numbers = #tpu.dot_dimension_numbers<[1], [0], [0], [1], [0, 0, 1, 1], [], []>} : vector<8x128xbf16>, vector<128x128xbf16>, vector<8x128xf32> -> vector<8x128xf32>
    %3 = arith.truncf %2 : vector<8x128xf32> to vector<8x128xbf16>
    %c0_3 = arith.constant 0 : index
    %c0_4 = arith.constant 0 : index
    %4 = vector.load %arg3[%c0_3, %c0_4] : memref<1x128xbf16, #tpu.memory_space<vmem>>, vector<1x128xbf16>
    %5 = vector.broadcast %4 : vector<1x128xbf16> to vector<8x128xbf16>
    %6 = arith.addf %3, %5 : vector<8x128xbf16>
    %cst_5 = arith.constant 0.000000e+00 : bf16
    %7 = vector.broadcast %cst_5 : bf16 to vector<8x128xbf16>
    %8 = arith.maximumf %6, %7 : vector<8x128xbf16>
    %c0_6 = arith.constant 0 : index
    %c0_7 = arith.constant 0 : index
    %9 = vector.load %arg4[%c0_6, %c0_7] : memref<128x128xbf16, #tpu.memory_space<vmem>>, vector<128x128xbf16>
    %cst_8 = arith.constant dense<0.000000e+00> : vector<8x128xf32>
    %10 = tpu.matmul %8, %9, %cst_8 {dimension_numbers = #tpu.dot_dimension_numbers<[1], [0], [0], [1], [0, 0, 1, 1], [], []>} : vector<8x128xbf16>, vector<128x128xbf16>, vector<8x128xf32> -> vector<8x128xf32>
    %11 = arith.truncf %10 : vector<8x128xf32> to vector<8x128xbf16>
    %c0_9 = arith.constant 0 : index
    %c0_10 = arith.constant 0 : index
    %12 = vector.load %arg5[%c0_9, %c0_10] : memref<1x128xbf16, #tpu.memory_space<vmem>>, vector<1x128xbf16>
    %13 = vector.broadcast %12 : vector<1x128xbf16> to vector<8x128xbf16>
    %14 = arith.addf %11, %13 : vector<8x128xbf16>
    %cst_11 = arith.constant 0.000000e+00 : bf16
    %15 = vector.broadcast %cst_11 : bf16 to vector<8x128xbf16>
    %16 = arith.maximumf %14, %15 : vector<8x128xbf16>
    %c0_12 = arith.constant 0 : index
    %c0_13 = arith.constant 0 : index
    %17 = vector.load %arg6[%c0_12, %c0_13] : memref<128x128xbf16, #tpu.memory_space<vmem>>, vector<128x128xbf16>
    %cst_14 = arith.constant dense<0.000000e+00> : vector<8x128xf32>
    %18 = tpu.matmul %16, %17, %cst_14 {dimension_numbers = #tpu.dot_dimension_numbers<[1], [0], [0], [1], [0, 0, 1, 1], [], []>} : vector<8x128xbf16>, vector<128x128xbf16>, vector<8x128xf32> -> vector<8x128xf32>
    %19 = arith.truncf %18 : vector<8x128xf32> to vector<8x128xbf16>
    %c0_15 = arith.constant 0 : index
    %c0_16 = arith.constant 0 : index
    %20 = vector.load %arg7[%c0_15, %c0_16] : memref<1x128xbf16, #tpu.memory_space<vmem>>, vector<1x128xbf16>
    %21 = vector.broadcast %20 : vector<1x128xbf16> to vector<8x128xbf16>
    %22 = arith.addf %19, %21 : vector<8x128xbf16>
    %c0_17 = arith.constant 0 : index
    %c0_18 = arith.constant 0 : index
    %23 = vector.load %arg8[%c0_17, %c0_18] : memref<8x128xbf16, #tpu.memory_space<vmem>>, vector<8x128xbf16>
    tpu.vector_store %arg8[%c0_17, %c0_18], %22 {strides = array<i32>} : memref<8x128xbf16, #tpu.memory_space<vmem>>, vector<8x128xbf16>,
    return
  }
  func.func @transform_0(%arg0: i32) -> (i32, i32) {
    %c0_i32 = arith.constant 0 : i32
    %c0_i32_0 = arith.constant 0 : i32
    return %arg0, %c0_i32 : i32, i32
  }
  func.func @transform_1(%arg0: i32) -> (i32, i32) {
    %c0_i32 = arith.constant 0 : i32
    %c0_i32_0 = arith.constant 0 : i32
    %c0_i32_1 = arith.constant 0 : i32
    return %c0_i32, %c0_i32_0 : i32, i32
  }
  func.func @transform_2(%arg0: i32) -> (i32, i32) {
    %c0_i32 = arith.constant 0 : i32
    %c0_i32_0 = arith.constant 0 : i32
    %c0_i32_1 = arith.constant 0 : i32
    return %c0_i32, %c0_i32_0 : i32, i32
  }
  func.func @transform_3(%arg0: i32) -> (i32, i32) {
    %c0_i32 = arith.constant 0 : i32
    %c0_i32_0 = arith.constant 0 : i32
    %c0_i32_1 = arith.constant 0 : i32
    return %c0_i32, %c0_i32_0 : i32, i32
  }
  func.func @transform_4(%arg0: i32) -> (i32, i32) {
    %c0_i32 = arith.constant 0 : i32
    %c0_i32_0 = arith.constant 0 : i32
    %c0_i32_1 = arith.constant 0 : i32
    return %c0_i32, %c0_i32_0 : i32, i32
  }
  func.func @transform_5(%arg0: i32) -> (i32, i32) {
    %c0_i32 = arith.constant 0 : i32
    %c0_i32_0 = arith.constant 0 : i32
    %c0_i32_1 = arith.constant 0 : i32
    return %c0_i32, %c0_i32_0 : i32, i32
  }
  func.func @transform_6(%arg0: i32) -> (i32, i32) {
    %c0_i32 = arith.constant 0 : i32
    %c0_i32_0 = arith.constant 0 : i32
    %c0_i32_1 = arith.constant 0 : i32
    return %c0_i32, %c0_i32_0 : i32, i32
  }
  func.func @transform_7(%arg0: i32) -> (i32, i32) {
    %c0_i32 = arith.constant 0 : i32
    %c0_i32_0 = arith.constant 0 : i32
    return %arg0, %c0_i32 : i32, i32
  }
}

</mosaic_0001>

<bundles_post_ra>
// kernel: tpu_custom_call.1
= control target key start
LH: loop header
LB: loop body
LE: loop exit
PB: predicated region body
PF: predicated region fallthrough
CT: control target
= control target key end

     0   :  { %12 = vsyncpa [#allocation3], 0  ;;  %s810_s0 = inlined_call_operand.hbm [shape: bf16[8,128], index: 0, kind: input, shape index: {}]   ;;  %s811_s1 = inlined_call_operand.hbm [shape: bf16[128,128], index: 1, kind: input, shape index: {}]   ;;  %s812_s2 = inlined_call_operand.vmem [shape: bf16[1,128], index: 2, kind: input, shape index: {}]   ;;  %s813_s3 = inlined_call_operand.hbm [shape: bf16[128,128], index: 3, kind: input, shape index: {}]   ;;  %s814_s4 = inlined_call_operand.vmem [shape: bf16[1,128], index: 4, kind: input, shape index: {}]   ;;  %s815_s5 = inlined_call_operand.hbm [shape: bf16[128,128], index: 5, kind: input, shape index: {}]   ;;  %s816_s6 = inlined_call_operand.vmem [shape: bf16[1,128], index: 6, kind: input, shape index: {}]   ;;  %s817_s7 = inlined_call_operand.hbm [shape: bf16[8,128], index: 7, kind: output, shape index: {}]  }
   0x1   :  { %13 = vsyncpa [#allocation6], 0 }
   0x2   :  { %14 = vsyncpa [#allocation9], 0 }
   0x3   :  { %15 = vsyncpa [#allocation4], 0  ;;  %s697_s24 = smov [#allocation5]  }
   0x4   :  { %s31_s25 = sshll.u32 %s697_s24, 4  ;;  %s32_s25 = int_to_ptr.vmem [resolvable:$true] %s31_s25 }
   0x5   :  { %s597_s26 = scalar_lea.vmem %s32_s25, 1024  ;;  %p602_p1 = scmp.lt.s32.totalorder %s32_s25, %s32_s25 }
   0x6   :  { %p598_p0 = scmp.ne.s32.totalorder %s32_s25, %s597_s26  ;;  %p603_p2 = scmp.lt.s32.totalorder %s597_s26, %s597_s26 }
   0x8   :  { %p604_p3 = por %p603_p2, %p602_p1 }
   0xa   :  { %p605_p4 = pnand %p604_p3, %p598_p0 }
   0xc   :  { %608 = shalt.err (!%p605_p4)
}
   0xd   :  { %s698_s27 = smov 64   ;;  %s699_s28 = smov 4  }
   0xe   :  { %37 = dma.hbm_to_vmem [thread:$0]  %s811_s1, 1024, %s32_s25, [#allocation6], %s698_s27, %s698_s27, %s699_s28  }
   0xf   :  { %s700_s8 = smov [#allocation2]   ;;  %s701_s10 = smov [#allocation7]  }
  0x10   :  { %s22_s9 = sshll.u32 %s700_s8, 4  ;;  %s45_s11 = sshll.u32 %s701_s10, 4  ;;  %s23_s9 = int_to_ptr.vmem [resolvable:$true] %s22_s9  ;;  %s46_s11 = int_to_ptr.vmem [resolvable:$true] %s45_s11 }
  0x11   :  { %s617_s12 = scalar_lea.vmem %s23_s9, 64  ;;  %p622_p6 = scmp.lt.s32.totalorder %s23_s9, %s23_s9 }
  0x12   :  { %p618_p5 = scmp.ne.s32.totalorder %s23_s9, %s617_s12  ;;  %p623_p7 = scmp.lt.s32.totalorder %s617_s12, %s617_s12 }
  0x14   :  { %p624_p8 = por %p623_p7, %p622_p6 }
  0x16   :  { %p625_p9 = pnand %p624_p8, %p618_p5 }
  0x18   :  { %628 = shalt.err (!%p625_p9)
}
  0x19   :  { %25 = dma.hbm_to_vmem [thread:$0]  %s810_s0, 64, %s23_s9, [#allocation3]  }
  0x1a   :  { %s637_s15 = scalar_lea.vmem %s46_s11, 1024  ;;  %p642_p11 = scmp.lt.s32.totalorder %s46_s11, %s46_s11 }
  0x1b   :  { %p638_p10 = scmp.ne.s32.totalorder %s46_s11, %s637_s15  ;;  %p643_p12 = scmp.lt.s32.totalorder %s637_s15, %s637_s15 }
  0x1d   :  { %p644_p13 = por %p643_p12, %p642_p11 }
  0x1f   :  { %p645_p0 = pnand %p644_p13, %p638_p10 }
  0x21   :  { %648 = shalt.err (!%p645_p0)
}
  0x22   :  { %51 = dma.hbm_to_vmem [thread:$0]  %s813_s3, 1024, %s46_s11, [#allocation6], %s698_s27, %s698_s27, %s699_s28  }
  0x23   :  { %s702_s17 = smov [#allocation8]  }
  0x24   :  { %s59_s18 = sshll.u32 %s702_s17, 4  ;;  %s60_s18 = int_to_ptr.vmem [resolvable:$true] %s59_s18 }
  0x25   :  { %s657_s19 = scalar_lea.vmem %s60_s18, 1024  ;;  %p662_p2 = scmp.lt.s32.totalorder %s60_s18, %s60_s18 }
  0x26   :  { %p658_p1 = scmp.ne.s32.totalorder %s60_s18, %s657_s19  ;;  %p663_p3 = scmp.lt.s32.totalorder %s657_s19, %s657_s19 }
  0x28   :  { %p664_p4 = por %p663_p3, %p662_p2 }
  0x2a   :  { %p665_p5 = pnand %p664_p4, %p658_p1 }
  0x2c   :  { %668 = shalt.err (!%p665_p5)
}
  0x2d   :  { %65 = dma.hbm_to_vmem [thread:$0]  %s815_s5, 1024, %s60_s18, [#allocation9], %s698_s27, %s698_s27, %s699_s28  }
  0x2e   :  { %689 = dma.done.wait [#allocation3], 64  }
  0x2f   :  { %690 = vsyncadd [#allocation3], 4294967232 }
  0x30   :  { %691 = dma.done.wait [#allocation6], 2048  }
  0x31   :  { %692 = vsyncadd [#allocation6], 4294965248 }
  0x32   :  { %693 = dma.done.wait [#allocation9], 1024  }
  0x33   :  { %694 = vsyncadd [#allocation9], 4294966272  ;;  %v703_v0 = vmov 0.0   ;;  %vm704_vm0 = vmmov 0   ;;  %v565_v1 = vld [vmem:[#allocation5 + $0x38] sm:$0xff]   ;;  %v566_v2 = vld [vmem:[#allocation5 + $0x30] sm:$0xff]   ;;  %v191_v24 = vlaneseq }
  0x34   :  { %495 = vmatprep.subr.bf16.mxu0 %v703_v0  ;;  %511 = vmatprep.mubr.msk.bf16.mxu0 %vm704_vm0, %v703_v0  ;;  %v567_v3 = vld [vmem:[#allocation5 + $0x28] sm:$0xff]   ;;  %v573_v4 = vld [vmem:[#allocation7 + $0x38] sm:$0xff]   ;;  %v568_v5 = vld [vmem:[#allocation5 + $0x20] sm:$0xff]   ;;  %v705_v35 = vmov 0   ;;  %s706_s24 = smov [#allocation10]  }
  0x35   :  { %515 = vmatprep.subr.bf16.mxu1 %v703_v0  ;;  %531 = vmatprep.mubr.msk.bf16.mxu1 %vm704_vm0, %v703_v0  ;;  %v574_v6 = vld [vmem:[#allocation7 + $0x30] sm:$0xff]   ;;  %v569_v7 = vld [vmem:[#allocation5 + $0x18] sm:$0xff]   ;;  %v575_v8 = vld [vmem:[#allocation7 + $0x28] sm:$0xff]   ;;  %v192_v25 = vshrl.u32 %v191_v24, 7  ;;  %s433_s25 = sshll.u32 %s706_s24, 4  ;;  %s434_s25 = int_to_ptr.vmem [resolvable:$true] %s433_s25 }
  0x36   :  { %496 = vmatpush3.bf16.msra.mxu0 %v565_v1  ;;  %516 = vmatpush3.bf16.msra.mxu1 %v573_v4  ;;  %v570_v9 = vld [vmem:[#allocation5 + $0x10] sm:$0xff]   ;;  %v576_v10 = vld [vmem:[#allocation7 + $0x20] sm:$0xff]   ;;  %v571_v11 = vld [vmem:[#allocation5 + $0x8] sm:$0xff]   ;;  %p674_p7 = scmp.lt.s32.totalorder %s434_s25, %s434_s25 }
  0x37   :  { %497 = vmatprep.subr.bf16.mxu0 %v703_v0  ;;  %517 = vmatprep.subr.bf16.mxu1 %v703_v0  ;;  %v577_v12 = vld [vmem:[#allocation7 + $0x18] sm:$0xff]   ;;  %v572_v13 = vld [vmem:[#allocation5] sm:$0xff]   ;;  %v578_v14 = vld [vmem:[#allocation7 + $0x10] sm:$0xff]   ;;  %v193_v28 = vsub.s32 0, %v192_v25 }
  0x38   :  { %v81_v15 = vld [vmem:[#allocation2] sm:$0xf]  ;;  %v579_v16 = vld [vmem:[#allocation7 + $0x8] sm:$0xff]   ;;  %v580_v17 = vld [vmem:[#allocation7] sm:$0xff]  }
  0x39   :  { %v581_v18 = vld [vmem:[#allocation8 + $0x38] sm:$0xff]   ;;  %v582_v19 = vld [vmem:[#allocation8 + $0x30] sm:$0xff]   ;;  %v583_v20 = vld [vmem:[#allocation8 + $0x28] sm:$0xff]  }
  0x3a   :  { %498 = vmatpush3.bf16.msra.mxu0 %v566_v2  ;;  %518 = vmatpush3.bf16.msra.mxu1 %v574_v6  ;;  %v584_v21 = vld [vmem:[#allocation8 + $0x20] sm:$0xff]   ;;  %v585_v22 = vld [vmem:[#allocation8 + $0x18] sm:$0xff]   ;;  %v586_v23 = vld [vmem:[#allocation8 + $0x10] sm:$0xff]  }
  0x3b   :  { %499 = vmatprep.subr.bf16.mxu0 %v703_v0  ;;  %519 = vmatprep.subr.bf16.mxu1 %v703_v0  ;;  %v187_v26 = vld [vmem:[%s812_s2] sm:$0x1]  ;;  %v587_v38 = vld [vmem:[#allocation8 + $0x8] sm:$0xff]   ;;  %v588_v39 = vld [vmem:[#allocation8] sm:$0xff]  }
  0x3c   :  { %v189_v27 = vpack.i.b16 %v187_v26, %v187_v26  ;;  %v302_v40 = vld [vmem:[%s814_s4] sm:$0x1]  ;;  %s669_s4 = scalar_lea.vmem %s434_s25, 64 }
  0x3d   :  { %v304_v41 = vpack.i.b16 %v302_v40, %v302_v40  ;;  %v417_v50 = vld [vmem:[%s816_s6] sm:$0x1]  ;;  %p670_p6 = scmp.ne.s32.totalorder %s434_s25, %s669_s4  ;;  %p675_p8 = scmp.lt.s32.totalorder %s669_s4, %s669_s4 }
  0x3e   :  { %500 = vmatpush3.bf16.msra.mxu0 %v567_v3  ;;  %520 = vmatpush3.bf16.msra.mxu1 %v575_v8  ;;  %v194_v29 = vrot.slane %v189_v27, %v193_v28  ;;  %v419_v51 = vpack.i.b16 %v417_v50, %v417_v50 }
  0x3f   :  { %501 = vmatprep.subr.bf16.mxu0 %v703_v0  ;;  %521 = vmatprep.subr.bf16.mxu1 %v703_v0  ;;  %v309_v42 = vrot.slane %v304_v41, %v193_v28  ;;  %p676_p9 = por %p675_p8, %p674_p7 }
  0x40   :  { %v424_v52 = vrot.slane %v419_v51, %v193_v28 }
  0x41   :  { %p677_p10 = pnand %p676_p9, %p670_p6 }
  0x42   :  { %502 = vmatpush3.bf16.msra.mxu0 %v568_v5  ;;  %522 = vmatpush3.bf16.msra.mxu1 %v576_v10 }
  0x43   :  { %503 = vmatprep.subr.bf16.mxu0 %v703_v0  ;;  %523 = vmatprep.subr.bf16.mxu1 %v703_v0 }
  0x46   :  { %504 = vmatpush3.bf16.msra.mxu0 %v569_v7  ;;  %524 = vmatpush3.bf16.msra.mxu1 %v577_v12 }
  0x47   :  { %505 = vmatprep.subr.bf16.mxu0 %v703_v0  ;;  %525 = vmatprep.subr.bf16.mxu1 %v703_v0 }
  0x4a   :  { %506 = vmatpush3.bf16.msra.mxu0 %v570_v9  ;;  %526 = vmatpush3.bf16.msra.mxu1 %v578_v14 }
  0x4b   :  { %507 = vmatprep.subr.bf16.mxu0 %v703_v0  ;;  %527 = vmatprep.subr.bf16.mxu1 %v703_v0 }
  0x4e   :  { %508 = vmatpush3.bf16.msra.mxu0 %v571_v11  ;;  %528 = vmatpush3.bf16.msra.mxu1 %v579_v16 }
  0x4f   :  { %509 = vmatprep.subr.bf16.mxu0 %v703_v0  ;;  %529 = vmatprep.subr.bf16.mxu1 %v703_v0 }
  0x52   :  { %510 = vmatpush3.bf16.msra.mxu0 %v572_v13  ;;  %530 = vmatpush3.bf16.msra.mxu1 %v580_v17 }
  0x53   :  { %535 = vmatprep.subr.bf16.mxu0 %v703_v0 }
  0x55   :  { %512 = vmatmul.mubr.bf16.vlgmr.msra.gmra.mxu0 %v81_v15 }
  0x56   :  { %551 = vmatprep.mubr.msk.bf16.mxu0 %vm704_vm0, %v703_v0  ;;  %536 = vmatpush3.bf16.msra.mxu0 %v581_v18 }
  0x57   :  { %537 = vmatprep.subr.bf16.mxu0 %v703_v0 }
  0x5a   :  { %538 = vmatpush3.bf16.msra.mxu0 %v582_v19 }
  0x5b   :  { %539 = vmatprep.subr.bf16.mxu0 %v703_v0 }
  0x5e   :  { %540 = vmatpush3.bf16.msra.mxu0 %v583_v20 }
  0x5f   :  { %541 = vmatprep.subr.bf16.mxu0 %v703_v0 }
  0x62   :  { %542 = vmatpush3.bf16.msra.mxu0 %v584_v21 }
  0x63   :  { %543 = vmatprep.subr.bf16.mxu0 %v703_v0 }
  0x66   :  { %544 = vmatpush3.bf16.msra.mxu0 %v585_v22 }
  0x67   :  { %545 = vmatprep.subr.bf16.mxu0 %v703_v0 }
  0x6a   :  { %546 = vmatpush3.bf16.msra.mxu0 %v586_v23 }
  0x6b   :  { %547 = vmatprep.subr.bf16.mxu0 %v703_v0 }
  0x6e   :  { %548 = vmatpush3.bf16.msra.mxu0 %v587_v38 }
  0x6f   :  { %549 = vmatprep.subr.bf16.mxu0 %v703_v0 }
  0x72   :  { %550 = vmatpush3.bf16.msra.mxu0 %v588_v39 }
 0x115   :  { %v180_v30 = vpop.f32.mrf.mxu0 }
 0x116   :  { %v186_v31 = vpack.c.bf16 %v180_v30, %v180_v30 }
 0x117   :  { %v513_v32 = vpop.f32.mrf.mxu0 }
 0x118   :  { %v195_v33 = vadd.bf16 %v194_v29, %v186_v31 }
 0x119   :  { %v183_v34 = vpop.f32.mrf.mxu0 }
 0x11a   :  { %v196_v36 = vmax.bf16 %v705_v35, %v195_v33 }
 0x11b   :  { %v514_v37 = vpop.f32.mrf.mxu0 }
 0x11c   :  { %532 = vmatmul.mubr.bf16.vlgmr.msra.gmra.mxu1 %v196_v36 }
 0x1dc   :  { %v295_v43 = vpop.f32.mrf.mxu1 }
 0x1dd   :  { %v301_v44 = vpack.c.bf16 %v295_v43, %v295_v43 }
 0x1de   :  { %v533_v45 = vpop.f32.mrf.mxu1 }
 0x1df   :  { %v310_v46 = vadd.bf16 %v309_v42, %v301_v44 }
 0x1e0   :  { %v298_v47 = vpop.f32.mrf.mxu1 }
 0x1e1   :  { %v311_v48 = vmax.bf16 %v705_v35, %v310_v46 }
 0x1e2   :  { %v534_v49 = vpop.f32.mrf.mxu1 }
 0x1e3   :  { %552 = vmatmul.mubr.bf16.vlgmr.msra.gmra.mxu0 %v311_v48 }
 0x2a3   :  { %v410_v53 = vpop.f32.mrf.mxu0 }
 0x2a4   :  { %v416_v54 = vpack.c.bf16 %v410_v53, %v410_v53 }
 0x2a5   :  { %v553_v55 = vpop.f32.mrf.mxu0 }
 0x2a6   :  { %v425_v56 = vadd.bf16 %v424_v52, %v416_v54 }
 0x2a7   :  { %v413_v57 = vpop.f32.mrf.mxu0 }
 0x2a8   :  { %426 = vst [vmem:[#allocation10] sm:$0xf] %v425_v56 }
 0x2a9   :  { %v554_v58 = vpop.f32.mrf.mxu0 }
 0x2aa   :  { %680 = shalt.err (!%p677_p10)
}
 0x2ab   :  { %436 = dma.vmem_to_hbm [thread:$0]  %s434_s25, 64, %s817_s7, [#allocation4]  }
 0x2ac   :  { %695 = dma.done.wait [#allocation4], 64  }
 0x2ad   :  { %696 = vsyncadd [#allocation4], 4294967232 }
 0x2ae   :  { %440 = vsyncpa [#allocation3], 1 }
 0x2af   :  { %441 = vsyncpa [#allocation6], 1 }
 0x2b0   :  { %442 = vsyncpa [#allocation9], 1 }
 0x2b1   :  { %443 = vsyncpa [#allocation4], 1 }

</bundles_post_ra>
